<compile_context>
chip_gen: v5e
topology: v5e:2x2
jax: 0.10.0
libtpu: 0.0.40
codegen_flags: <defaults>
</compile_context>

<pallas_src>
import functools
import math

import numpy as np
import jax
import jax.numpy as jnp
from jax.experimental import pallas as pl
from jax.experimental.pallas import tpu as pltpu


_VMEM_LIMIT = 32 * 1024 * 1024
_LEN_BUCKETS = (8, 16, 32, 48, 64, 96, 128, 160)


# --------------------------------------------------------------------------
# Small helpers
# --------------------------------------------------------------------------
def _bucket(n):
    for b in _LEN_BUCKETS:
        if n <= b:
            return b
    return ((n + 127) // 128) * 128


def _rep_spec(shape):
    zeros = (0,) * len(shape)
    return pl.BlockSpec(shape, lambda b, _z=zeros: _z)


def _ln(x, g, b, eps=1e-5):
    mu = jnp.mean(x, axis=-1, keepdims=True)
    var = jnp.mean(jnp.square(x - mu), axis=-1, keepdims=True)
    return (x - mu) * jax.lax.rsqrt(var + eps) * g + b


def length_mask(lens, L):
    idx = jnp.arange(L)[None, :]
    l = jnp.asarray(lens, dtype=jnp.int32)[:, None]
    return (idx < l).astype(jnp.float32)


def pad_to_len(x, L):
    cur = x.shape[1]
    if cur == L:
        return x
    if cur > L:
        return x[:, :L]
    return jnp.pad(x, ((0, 0), (0, L - cur), (0, 0)))


def pad_seqs(seq_list):
    """Pad a list of (len_i, D) arrays to a static bucketed max length."""
    lens = [int(s.shape[0]) for s in seq_list]
    maxlen = _bucket(max(lens))
    padded = jnp.stack(
        [jnp.pad(s, ((0, maxlen - s.shape[0]), (0, 0))) for s in seq_list], axis=0)
    return lens, padded


def batch_inner_product(a, b):
    return jnp.sum(a * b, axis=-1)


# --------------------------------------------------------------------------
# Pallas kernels
# --------------------------------------------------------------------------
def _linear_kernel(x_ref, w_ref, b_ref, o_ref):
    acc = jnp.dot(x_ref[...].astype(jnp.bfloat16), w_ref[...],
                  preferred_element_type=jnp.float32)
    o_ref[...] = (acc + b_ref[...]).astype(o_ref.dtype)


def pallas_linear(x, w, b):
    """y = x @ w + b.  w is bf16, bias f32 (1, N); M axis tiled & parallel."""
    *lead, K = x.shape
    N = w.shape[1]
    M = int(np.prod(lead)) if lead else 1
    x2 = x.reshape(M, K).astype(jnp.float32)
    tile_m = M if M <= 512 else 512
    grid_m = pl.cdiv(M, tile_m)
    cost = pl.CostEstimate(flops=int(2 * M * K * N), transcendentals=0,
                           bytes_accessed=int(4 * M * K + 2 * K * N + 4 * M * N))
    out = pl.pallas_call(
        _linear_kernel,
        out_shape=jax.ShapeDtypeStruct((M, N), jnp.float32),
        grid=(grid_m,),
        in_specs=[pl.BlockSpec((tile_m, K), lambda i: (i, 0)),
                  pl.BlockSpec((K, N), lambda i: (0, 0)),
                  pl.BlockSpec((1, N), lambda i: (0, 0))],
        out_specs=pl.BlockSpec((tile_m, N), lambda i: (i, 0)),
        compiler_params=pltpu.CompilerParams(
            dimension_semantics=("parallel",), vmem_limit_bytes=_VMEM_LIMIT),
        cost_estimate=cost,
    )(x2, w, b)
    return out.reshape(*lead, N)


def _self_block_kernel(x_ref, kmask_ref, qmask_ref,
                       wqkv_ref, bqkv_ref, wo_ref, bo_ref,
                       g1_ref, be1_ref, w1_ref, b1_ref,
                       w2_ref, b2_ref, g2_ref, be2_ref,
                       o_ref, *, n_heads):
    f32 = jnp.float32
    bf16 = jnp.bfloat16
    x = x_ref[0]                        # (L, D) f32
    km = kmask_ref[0]                   # (1, L)  key mask
    qm = qmask_ref[0]                   # (L, 1)  query mask
    L, D = x.shape
    H = n_heads
    Dh = D // H
    scale = 1.0 / math.sqrt(Dh)

    # Fused QKV projection (single (D, 3D) matmul on the MXU).
    qkv = jnp.dot(x.astype(bf16), wqkv_ref[...],
                  preferred_element_type=f32) + bqkv_ref[...]        # (L, 3D)

    attn = jnp.zeros((L, D), f32)
    for h in range(H):
        q_h = qkv[:, h * Dh:(h + 1) * Dh]
        k_h = qkv[:, D + h * Dh:D + (h + 1) * Dh]
        v_h = qkv[:, 2 * D + h * Dh:2 * D + (h + 1) * Dh]
        s = jax.lax.dot_general(q_h.astype(bf16), k_h.astype(bf16),
                                (((1,), (1,)), ((), ())),
                                preferred_element_type=f32) * scale  # (L, L)
        s = jnp.where(km > 0.0, s, f32(-1e30))
        s = s - jnp.max(s, axis=-1, keepdims=True)
        p = jnp.exp(s)
        p = p * pl.reciprocal(jnp.sum(p, axis=-1, keepdims=True), approx=True)
        ctx_h = jnp.dot(p.astype(bf16), v_h.astype(bf16),
                        preferred_element_type=f32)                  # (L, Dh)
        attn = attn + jnp.dot(ctx_h.astype(bf16), wo_ref[h],
                              preferred_element_type=f32)            # (L, D)
    attn = attn + bo_ref[...]

    y = _ln(x + attn, g1_ref[...], be1_ref[...])
    f = jnp.dot(y.astype(bf16), w1_ref[...], preferred_element_type=f32) + b1_ref[...]
    f = jnp.maximum(f, 0.0)
    f = jnp.dot(f.astype(bf16), w2_ref[...], preferred_element_type=f32) + b2_ref[...]
    out = _ln(y + f, g2_ref[...], be2_ref[...])
    o_ref[0] = (out * qm).astype(o_ref.dtype)


def _cross_block_kernel(xq_ref, xkv_ref, kmask_ref, qmask_ref,
                        wq_ref, bq_ref, wkv_ref, bkv_ref, wo_ref, bo_ref,
                        g1_ref, be1_ref, w1_ref, b1_ref,
                        w2_ref, b2_ref, g2_ref, be2_ref,
                        o_ref, *, n_heads):
    f32 = jnp.float32
    bf16 = jnp.bfloat16
    xq = xq_ref[0]                      # (Lq, D)
    xkv = xkv_ref[0]                    # (Lk, D)
    km = kmask_ref[0]                   # (1, Lk)
    qm = qmask_ref[0]                   # (Lq, 1)
    Lq, D = xq.shape
    H = n_heads
    Dh = D // H
    scale = 1.0 / math.sqrt(Dh)

    q = jnp.dot(xq.astype(bf16), wq_ref[...],
                preferred_element_type=f32) + bq_ref[...]            # (Lq, D)
    kv = jnp.dot(xkv.astype(bf16), wkv_ref[...],
                 preferred_element_type=f32) + bkv_ref[...]          # (Lk, 2D)

    attn = jnp.zeros((Lq, D), f32)
    for h in range(H):
        q_h = q[:, h * Dh:(h + 1) * Dh]
        k_h = kv[:, h * Dh:(h + 1) * Dh]
        v_h = kv[:, D + h * Dh:D + (h + 1) * Dh]
        s = jax.lax.dot_general(q_h.astype(bf16), k_h.astype(bf16),
                                (((1,), (1,)), ((), ())),
                                preferred_element_type=f32) * scale  # (Lq, Lk)
        s = jnp.where(km > 0.0, s, f32(-1e30))
        s = s - jnp.max(s, axis=-1, keepdims=True)
        p = jnp.exp(s)
        p = p * pl.reciprocal(jnp.sum(p, axis=-1, keepdims=True), approx=True)
        ctx_h = jnp.dot(p.astype(bf16), v_h.astype(bf16),
                        preferred_element_type=f32)                  # (Lq, Dh)
        attn = attn + jnp.dot(ctx_h.astype(bf16), wo_ref[h],
                              preferred_element_type=f32)            # (Lq, D)
    attn = attn + bo_ref[...]

    y = _ln(xq + attn, g1_ref[...], be1_ref[...])
    f = jnp.dot(y.astype(bf16), w1_ref[...], preferred_element_type=f32) + b1_ref[...]
    f = jnp.maximum(f, 0.0)
    f = jnp.dot(f.astype(bf16), w2_ref[...], preferred_element_type=f32) + b2_ref[...]
    out = _ln(y + f, g2_ref[...], be2_ref[...])
    o_ref[0] = (out * qm).astype(o_ref.dtype)


def _seq2vec_kernel(x_ref, m_ref, ws_ref, bs_ref, wo_ref, bo_ref, o_ref):
    x = x_ref[0]                                              # (L, D)
    m = m_ref[0]                                              # (L, 1)
    # Score projection (N=1) done as an in-kernel reduction, never stored.
    s = jnp.sum(x * ws_ref[...], axis=-1, keepdims=True) + bs_ref[...]   # (L, 1)
    s = jnp.where(m > 0.0, s, jnp.float32(-1e30))
    s = s - jnp.max(s, axis=0, keepdims=True)
    p = jnp.exp(s)
    p = p * pl.reciprocal(jnp.sum(p, axis=0, keepdims=True), approx=True)
    vec = jnp.sum(p * x, axis=0, keepdims=True)               # (1, D)
    out = jnp.dot(vec.astype(jnp.bfloat16), wo_ref[...],
                  preferred_element_type=jnp.float32) + bo_ref[...]      # (1, Do)
    o_ref[0] = out.astype(o_ref.dtype)


# --------------------------------------------------------------------------
# Fused-block wrappers
# --------------------------------------------------------------------------
def fused_self_block(p, x, lens):
    B, L, D = x.shape
    H = p["n_heads"]
    F = p["w1"].shape[1]
    Dh = D // H
    m = length_mask(lens, L)
    kmask = m.reshape(B, 1, L)
    qmask = m.reshape(B, L, 1)
    kern = functools.partial(_self_block_kernel, n_heads=H)
    flops = B * (6 * L * D * D + 4 * H * L * L * Dh + 2 * L * D * D + 4 * L * D * F)
    cost = pl.CostEstimate(flops=int(flops), transcendentals=int(B * H * L * L),
                           bytes_accessed=int(8 * B * L * D
                                              + 2 * (4 * D * D + 2 * D * F)))
    return pl.pallas_call(
        kern,
        out_shape=jax.ShapeDtypeStruct((B, L, D), jnp.float32),
        grid=(B,),
        in_specs=[
            pl.BlockSpec((1, L, D), lambda b: (b, 0, 0)),
            pl.BlockSpec((1, 1, L), lambda b: (b, 0, 0)),
            pl.BlockSpec((1, L, 1), lambda b: (b, 0, 0)),
            _rep_spec((D, 3 * D)),
            _rep_spec((1, 3 * D)),
            _rep_spec((H, Dh, D)),
            _rep_spec((1, D)),
            _rep_spec((1, D)),
            _rep_spec((1, D)),
            _rep_spec((D, F)),
            _rep_spec((1, F)),
            _rep_spec((F, D)),
            _rep_spec((1, D)),
            _rep_spec((1, D)),
            _rep_spec((1, D)),
        ],
        out_specs=pl.BlockSpec((1, L, D), lambda b: (b, 0, 0)),
        compiler_params=pltpu.CompilerParams(
            dimension_semantics=("parallel",), vmem_limit_bytes=_VMEM_LIMIT),
        cost_estimate=cost,
    )(x, kmask, qmask, p["wqkv"], p["bqkv"], p["wo"], p["bo"],
      p["g1"], p["be1"], p["w1"], p["b1"], p["w2"], p["b2"], p["g2"], p["be2"])


def fused_cross_block(p, a, a_lens, b_kv, b_lens):
    B, Lq, D = a.shape
    Lk = b_kv.shape[1]
    H = p["n_heads"]
    F = p["w1"].shape[1]
    Dh = D // H
    qmask = length_mask(a_lens, Lq).reshape(B, Lq, 1)
    kmask = length_mask(b_lens, Lk).reshape(B, 1, Lk)
    kern = functools.partial(_cross_block_kernel, n_heads=H)
    flops = B * (2 * Lq * D * D + 4 * Lk * D * D + 4 * H * Lq * Lk * Dh
                 + 2 * Lq * D * D + 4 * Lq * D * F)
    cost = pl.CostEstimate(flops=int(flops), transcendentals=int(B * H * Lq * Lk),
                           bytes_accessed=int(4 * B * (2 * Lq + Lk) * D
                                              + 2 * (4 * D * D + 2 * D * F)))
    return pl.pallas_call(
        kern,
        out_shape=jax.ShapeDtypeStruct((B, Lq, D), jnp.float32),
        grid=(B,),
        in_specs=[
            pl.BlockSpec((1, Lq, D), lambda b: (b, 0, 0)),
            pl.BlockSpec((1, Lk, D), lambda b: (b, 0, 0)),
            pl.BlockSpec((1, 1, Lk), lambda b: (b, 0, 0)),
            pl.BlockSpec((1, Lq, 1), lambda b: (b, 0, 0)),
            _rep_spec((D, D)),
            _rep_spec((1, D)),
            _rep_spec((D, 2 * D)),
            _rep_spec((1, 2 * D)),
            _rep_spec((H, Dh, D)),
            _rep_spec((1, D)),
            _rep_spec((1, D)),
            _rep_spec((1, D)),
            _rep_spec((D, F)),
            _rep_spec((1, F)),
            _rep_spec((F, D)),
            _rep_spec((1, D)),
            _rep_spec((1, D)),
            _rep_spec((1, D)),
        ],
        out_specs=pl.BlockSpec((1, Lq, D), lambda b: (b, 0, 0)),
        compiler_params=pltpu.CompilerParams(
            dimension_semantics=("parallel",), vmem_limit_bytes=_VMEM_LIMIT),
        cost_estimate=cost,
    )(a, b_kv, kmask, qmask, p["wq"], p["bq"], p["wkv"], p["bkv"],
      p["wo"], p["bo"], p["g1"], p["be1"], p["w1"], p["b1"],
      p["w2"], p["b2"], p["g2"], p["be2"])


def seq2vec_forward(p, x, lens):
    """Attention pooling (pooling='attention'): (B, L, D) -> (B, D)."""
    B, L, D = x.shape
    Dout = p["wo"].shape[1]
    kmask = length_mask(lens, L).reshape(B, L, 1)
    cost = pl.CostEstimate(flops=int(4 * B * L * D + 2 * B * D * Dout),
                           transcendentals=int(B * L),
                           bytes_accessed=int(4 * B * L * D + 4 * B * Dout))
    out = pl.pallas_call(
        _seq2vec_kernel,
        out_shape=jax.ShapeDtypeStruct((B, 1, Dout), jnp.float32),
        grid=(B,),
        in_specs=[
            pl.BlockSpec((1, L, D), lambda b: (b, 0, 0)),
            pl.BlockSpec((1, L, 1), lambda b: (b, 0, 0)),
            _rep_spec((1, D)),
            _rep_spec((1, 1)),
            _rep_spec((D, Dout)),
            _rep_spec((1, Dout)),
        ],
        out_specs=pl.BlockSpec((1, 1, Dout), lambda b: (b, 0, 0)),
        compiler_params=pltpu.CompilerParams(
            dimension_semantics=("parallel",), vmem_limit_bytes=_VMEM_LIMIT),
        cost_estimate=cost,
    )(x, kmask, p["ws"], p["bs"], p["wo"], p["bo"])
    return out[:, 0, :]


# --------------------------------------------------------------------------
# Parameter init (matmul weights bf16, biases / LN params f32)
# --------------------------------------------------------------------------
def init_self_block(key, d, n_heads, d_ff):
    ks = jax.random.split(key, 4)
    dh = d // n_heads
    s = 1.0 / math.sqrt(d)
    return {
        "n_heads": n_heads,
        "wqkv": (jax.random.normal(ks[0], (d, 3 * d), jnp.float32) * s).astype(jnp.bfloat16),
        "bqkv": jnp.zeros((1, 3 * d), jnp.float32),
        "wo": (jax.random.normal(ks[1], (d, d), jnp.float32) * s
               ).reshape(n_heads, dh, d).astype(jnp.bfloat16),
        "bo": jnp.zeros((1, d), jnp.float32),
        "g1": jnp.ones((1, d), jnp.float32), "be1": jnp.zeros((1, d), jnp.float32),
        "w1": (jax.random.normal(ks[2], (d, d_ff), jnp.float32) * s).astype(jnp.bfloat16),
        "b1": jnp.zeros((1, d_ff), jnp.float32),
        "w2": (jax.random.normal(ks[3], (d_ff, d), jnp.float32)
               * (1.0 / math.sqrt(d_ff))).astype(jnp.bfloat16),
        "b2": jnp.zeros((1, d), jnp.float32),
        "g2": jnp.ones((1, d), jnp.float32), "be2": jnp.zeros((1, d), jnp.float32),
    }


def init_cross_block(key, d, n_heads, d_ff):
    ks = jax.random.split(key, 5)
    dh = d // n_heads
    s = 1.0 / math.sqrt(d)
    return {
        "n_heads": n_heads,
        "wq": (jax.random.normal(ks[0], (d, d), jnp.float32) * s).astype(jnp.bfloat16),
        "bq": jnp.zeros((1, d), jnp.float32),
        "wkv": (jax.random.normal(ks[1], (d, 2 * d), jnp.float32) * s).astype(jnp.bfloat16),
        "bkv": jnp.zeros((1, 2 * d), jnp.float32),
        "wo": (jax.random.normal(ks[2], (d, d), jnp.float32) * s
               ).reshape(n_heads, dh, d).astype(jnp.bfloat16),
        "bo": jnp.zeros((1, d), jnp.float32),
        "g1": jnp.ones((1, d), jnp.float32), "be1": jnp.zeros((1, d), jnp.float32),
        "w1": (jax.random.normal(ks[3], (d, d_ff), jnp.float32) * s).astype(jnp.bfloat16),
        "b1": jnp.zeros((1, d_ff), jnp.float32),
        "w2": (jax.random.normal(ks[4], (d_ff, d), jnp.float32)
               * (1.0 / math.sqrt(d_ff))).astype(jnp.bfloat16),
        "b2": jnp.zeros((1, d), jnp.float32),
        "g2": jnp.ones((1, d), jnp.float32), "be2": jnp.zeros((1, d), jnp.float32),
    }


def init_transformer_encoder(key, d_in, d_model, n_heads, d_ff, n_blocks=1):
    ks = jax.random.split(key, n_blocks + 1)
    proj_w = (jax.random.normal(ks[0], (d_in, d_model), jnp.float32)
              * (1.0 / math.sqrt(d_in))).astype(jnp.bfloat16)
    return {"proj": {"w": proj_w, "b": jnp.zeros((1, d_model), jnp.float32)},
            "blocks": [init_self_block(ks[i + 1], d_model, n_heads, d_ff)
                       for i in range(n_blocks)]}


def init_seq2vec(key, d_in, d_out):
    ks = jax.random.split(key, 2)
    return {
        "ws": jax.random.normal(ks[0], (1, d_in), jnp.float32) * (1.0 / math.sqrt(d_in)),
        "bs": jnp.zeros((1, 1), jnp.float32),
        "wo": (jax.random.normal(ks[1], (d_in, d_out), jnp.float32)
               * (1.0 / math.sqrt(d_in))).astype(jnp.bfloat16),
        "bo": jnp.zeros((1, d_out), jnp.float32),
    }


# --------------------------------------------------------------------------
# Sub-module forward passes (dropout is eval-mode no-op)
# --------------------------------------------------------------------------
def transformer_encoder_forward(params, seqs, lens):
    # TODO(synk): TransformerEncoder source not provided; implemented as input
    # projection + post-LN self-attention blocks with key-padding masking.
    x = pallas_linear(seqs, params["proj"]["w"], params["proj"]["b"])
    for blk in params["blocks"]:
        x = fused_self_block(blk, x, lens)
    return x


def connection_forward(params, a, a_lens, b, b_lens):
    # TODO(synk): exact Connection semantics unavailable in the PyTorch source;
    # implemented as a post-LN cross-attention block (query=a masked by a_lens,
    # key/value=b masked by b_lens, padded query rows zeroed).
    return fused_cross_block(params, a, a_lens, b, b_lens)


# --------------------------------------------------------------------------
# RecurrentTransformerEncoder
# --------------------------------------------------------------------------
def recurrent_transformer_encoder_forward(params, seqs, ends):
    batch_size = seqs.shape[0]
    first_ends = [min(e[0], 50) for e in ends]
    first = pad_to_len(seqs, _bucket(max(first_ends)))
    enc0 = transformer_encoder_forward(params["encoder"], first, first_ends)
    encoded = [enc0[b, :first_ends[b]] for b in range(batch_size)]
    history = [[e] for e in encoded]
    context_lens = [len(e) for e in ends]

    for i in range(0, max(context_lens) - 1):
        workings = [j for j in range(batch_size) if context_lens[j] > i + 1]
        currs, prevs = [], []
        for working in workings:
            start, end = ends[working][i], ends[working][i + 1]
            curr_len = min(end - start, 150) if i == 0 else min(end - start, 100)
            currs.append(seqs[working, start:start + curr_len])
            prevs.append(encoded[working])
        curr_lens, currs_p = pad_seqs(currs)
        prev_lens, prevs_p = pad_seqs(prevs)
        currs_enc = transformer_encoder_forward(params["encoder"], currs_p, curr_lens)
        outputs = connection_forward(params["connection"], prevs_p, prev_lens,
                                     currs_enc, curr_lens)
        # Drop bucket padding so the PyTorch-style `[-seq_len:]` tail slice is
        # relative to the exact-max padded length (as without bucketing).
        outputs = outputs[:, :max(prev_lens)]
        for j, working in enumerate(workings):
            start, end = ends[working][i], ends[working][i + 1]
            seq_len = min(end - start, 50)
            new_enc = outputs[j][-seq_len:]
            encoded[working] = new_enc
            history[working].append(new_enc)

    history = [jnp.concatenate(h, axis=0) for h in history]
    return encoded, history


# --------------------------------------------------------------------------
# RecurrentTransformer (use_mcan=False, has_emb=False, bi_attention='last')
# --------------------------------------------------------------------------
def init_recurrent_transformer(key, dim_embeddings, n_heads, dim_ff,
                               dim_encoder, dim_encoder_ff, n_blocks=1):
    ks = jax.random.split(key, 4)
    # NOTE: last_encoder / mlp submodules exist in __init__ but are unused by
    # this forward configuration, so they are not instantiated.
    return {
        "transformer": {
            "encoder": init_transformer_encoder(ks[0], dim_embeddings, dim_encoder,
                                                n_heads, dim_encoder_ff, n_blocks),
            "connection": init_cross_block(ks[1], dim_encoder, n_heads, dim_ff),
        },
        "attn": init_cross_block(ks[2], dim_encoder, n_heads, dim_encoder_ff),
        "seq2vec": init_seq2vec(ks[3], dim_encoder, dim_encoder),
    }


def recurrent_transformer_forward(params, context, context_ends, options, option_lens):
    batch_size = context.shape[0]
    context_enc_list, _history = recurrent_transformer_encoder_forward(
        params["transformer"], context, context_ends)
    # bi_attention == 'last'
    context_lens, context_enc = pad_seqs(context_enc_list)

    logits = []
    n_options = options.shape[1]
    for i in range(n_options):                        # options.transpose(1, 0)
        option = options[:, i]
        opt_lens = [option_lens[b][i] for b in range(batch_size)]
        opt = pad_to_len(option, _bucket(max(opt_lens)))
        option_enc = transformer_encoder_forward(
            params["transformer"]["encoder"], opt, opt_lens)
        attn_co = connection_forward(params["attn"], context_enc, context_lens,
                                     option_enc, opt_lens)
        attn_oc = connection_forward(params["attn"], option_enc, opt_lens,
                                     context_enc, context_lens)
        ctx_vecs = seq2vec_forward(params["seq2vec"], attn_oc, opt_lens)
        opt_vecs = seq2vec_forward(params["seq2vec"], attn_co, context_lens)
        logits.append(batch_inner_product(ctx_vecs, opt_vecs))
    return jnp.stack(logits, axis=1)                  # (batch, n_options)


# --------------------------------------------------------------------------
# Demo
# --------------------------------------------------------------------------
if __name__ == "__main__":
    key = jax.random.PRNGKey(0)
    dim_embeddings = 32
    n_heads = 4
    dim_ff = 64
    dim_encoder = 32
    dim_encoder_ff = 64

    batch = 2
    n_options = 2
    ctx_len = 20
    opt_len = 8

    k_param, k_ctx, k_opt = jax.random.split(key, 3)
    params = init_recurrent_transformer(k_param, dim_embeddings, n_heads,
                                        dim_ff, dim_encoder, dim_encoder_ff,
                                        n_blocks=1)

    context = jax.random.normal(k_ctx, (batch, ctx_len, dim_embeddings), jnp.float32)
    options = jax.random.normal(k_opt, (batch, n_options, opt_len, dim_embeddings),
                                jnp.float32)
    context_ends = [[6, 12, 18], [6, 14]]            # utterance end indices per batch
    option_lens = [[8, 5], [6, 8]]                   # [batch][option] valid lengths

    logits = recurrent_transformer_forward(params, context, context_ends,
                                           options, option_lens)
    logits = jax.block_until_ready(logits)
    assert logits.shape == (batch, n_options)
    assert bool(jnp.all(jnp.isfinite(logits)))

    # Also exercise the RecurrentTransformerEncoder (the spec module) directly.
    encoded, history = recurrent_transformer_encoder_forward(
        params["transformer"], context, context_ends)
    jax.block_until_ready(history)
    assert len(encoded) == batch and len(history) == batch

    print("KERNEL_OK")
</pallas_src>

<mosaic_0001>
module attributes {stable_mosaic.version = 11 : i64} {
  func.func @_linear_kernel(%arg0: i32, %arg1: memref<16x32xf32, #tpu.memory_space<vmem>>, %arg2: memref<32x32xbf16, #tpu.memory_space<vmem>>, %arg3: memref<1x32xf32, #tpu.memory_space<vmem>>, %arg4: memref<16x32xf32, #tpu.memory_space<vmem>>) attributes {dimension_semantics = [#tpu.dimension_semantics<parallel>], iteration_bounds = array<i64: 1>, scalar_prefetch = 0 : i64, scratch_operands = 0 : i64, tpu.core_type = #tpu.core_type<tc>, window_params = [{transform_indices = @transform_0, window_bounds = array<i64: 16, 32>}, {pipeline_mode = #tpu.pipeline_mode<synchronous>, transform_indices = @transform_1, window_bounds = array<i64: 32, 32>}, {pipeline_mode = #tpu.pipeline_mode<synchronous>, transform_indices = @transform_2, window_bounds = array<i64: 1, 32>}, {transform_indices = @transform_3, window_bounds = array<i64: 16, 32>}]} {
    %c0 = arith.constant 0 : index
    %c0_0 = arith.constant 0 : index
    %0 = vector.load %arg1[%c0, %c0_0] : memref<16x32xf32, #tpu.memory_space<vmem>>, vector<16x32xf32>
    %1 = arith.truncf %0 : vector<16x32xf32> to vector<16x32xbf16>
    %c0_1 = arith.constant 0 : index
    %c0_2 = arith.constant 0 : index
    %2 = vector.load %arg2[%c0_1, %c0_2] : memref<32x32xbf16, #tpu.memory_space<vmem>>, vector<32x32xbf16>
    %cst = arith.constant dense<0.000000e+00> : vector<16x32xf32>
    %3 = tpu.matmul %1, %2, %cst {dimension_numbers = #tpu.dot_dimension_numbers<[1], [0], [0], [1], [0, 0, 1, 1], [], []>} : vector<16x32xbf16>, vector<32x32xbf16>, vector<16x32xf32> -> vector<16x32xf32>
    %c0_3 = arith.constant 0 : index
    %c0_4 = arith.constant 0 : index
    %4 = vector.load %arg3[%c0_3, %c0_4] : memref<1x32xf32, #tpu.memory_space<vmem>>, vector<1x32xf32>
    %5 = vector.broadcast %4 : vector<1x32xf32> to vector<16x32xf32>
    %6 = arith.addf %3, %5 : vector<16x32xf32>
    %c0_5 = arith.constant 0 : index
    %c0_6 = arith.constant 0 : index
    %7 = vector.load %arg4[%c0_5, %c0_6] : memref<16x32xf32, #tpu.memory_space<vmem>>, vector<16x32xf32>
    tpu.vector_store %arg4[%c0_5, %c0_6], %6 {strides = array<i32>} : memref<16x32xf32, #tpu.memory_space<vmem>>, vector<16x32xf32>,
    return
  }
  func.func @transform_0(%arg0: i32) -> (i32, i32) {
    %c0_i32 = arith.constant 0 : i32
    %c0_i32_0 = arith.constant 0 : i32
    return %arg0, %c0_i32 : i32, i32
  }
  func.func @transform_1(%arg0: i32) -> (i32, i32) {
    %c0_i32 = arith.constant 0 : i32
    %c0_i32_0 = arith.constant 0 : i32
    %c0_i32_1 = arith.constant 0 : i32
    return %c0_i32, %c0_i32_0 : i32, i32
  }
  func.func @transform_2(%arg0: i32) -> (i32, i32) {
    %c0_i32 = arith.constant 0 : i32
    %c0_i32_0 = arith.constant 0 : i32
    %c0_i32_1 = arith.constant 0 : i32
    return %c0_i32, %c0_i32_0 : i32, i32
  }
  func.func @transform_3(%arg0: i32) -> (i32, i32) {
    %c0_i32 = arith.constant 0 : i32
    %c0_i32_0 = arith.constant 0 : i32
    return %arg0, %c0_i32 : i32, i32
  }
}

</mosaic_0001>

<bundles_post_ra>
// kernel: tpu_custom_call.1
= control target key start
LH: loop header
LB: loop body
LE: loop exit
PB: predicated region body
PF: predicated region fallthrough
CT: control target
= control target key end

     0   :  { %8 = vsyncpa [#allocation3], 0  ;;  %s253_s0 = inlined_call_operand.hbm [shape: f32[16,32], index: 0, kind: input, shape index: {}]   ;;  %s254_s1 = inlined_call_operand.hbm [shape: bf16[32,32], index: 1, kind: input, shape index: {}]   ;;  %s255_s2 = inlined_call_operand.vmem [shape: f32[1,32], index: 2, kind: input, shape index: {}]   ;;  %s256_s3 = inlined_call_operand.hbm [shape: f32[16,32], index: 3, kind: output, shape index: {}]  }
   0x1   :  { %9 = vsyncpa [#allocation6], 0 }
   0x2   :  { %10 = vsyncpa [#allocation4], 0  ;;  %s15_s14 = sshll.u32 %s253_s0, 4  ;;  %s208_s15 = smov [#allocation2]   ;;  %s16_s14 = int_to_ptr.hbm [resolvable:$true] %s15_s14 }
   0x3   :  { %s17_s16 = sshll.u32 %s208_s15, 4  ;;  %s28_s19 = sshll.u32 %s254_s1, 4  ;;  %s18_s16 = int_to_ptr.vmem [resolvable:$true] %s17_s16  ;;  %s29_s19 = int_to_ptr.hbm [resolvable:$true] %s28_s19 }
   0x4   :  { %s209_s20 = smov 128   ;;  %s210_s21 = smov 8  }
   0x5   :  { %23 = dma.hbm_to_vmem [thread:$0]  %s16_s14, 256, %s18_s16, [#allocation3], %s209_s20, %s209_s20, %s210_s21  }
   0x6   :  { %s211_s22 = smov [#allocation5]   ;;  %s212_s24 = smov 64  }
   0x7   :  { %s30_s23 = sshll.u32 %s211_s22, 4  ;;  %s213_s0 = smov 4   ;;  %s31_s23 = int_to_ptr.vmem [resolvable:$true] %s30_s23 }
   0x8   :  { %36 = dma.hbm_to_vmem [thread:$0]  %s29_s19, 256, %s31_s23, [#allocation6], %s212_s24, %s212_s24, %s213_s0  }
   0x9   :  { %202 = dma.done.wait [#allocation3], 256  }
   0xa   :  { %203 = vsyncadd [#allocation3], 4294967040 }
   0xb   :  { %204 = dma.done.wait [#allocation6], 256  }
   0xc   :  { %205 = vsyncadd [#allocation6], 4294967040  ;;  %v121_v0 = vld [vmem:[#allocation5 + $0x8] sm:$0xff]  ;;  %v120_v1 = vld [vmem:[#allocation5] sm:$0xff]  ;;  %vm71_vm0 = vcmask 261120   ;;  %s214_s26 = smov [#allocation7]  }
   0xd   :  { %81 = vmatpush.bf16.msra.mxu0 %v121_v0  ;;  %v48_v2 = vld [vmem:[#allocation2] sm:$0xff]  ;;  %v49_v3 = vld [vmem:[#allocation2 + $0x8] sm:$0xff]  ;;  %s95_s27 = sshll.u32 %s214_s26, 4  ;;  %s97_s30 = sshll.u32 %s256_s3, 4  ;;  %s96_s27 = int_to_ptr.vmem [resolvable:$true] %s95_s27  ;;  %s98_s30 = int_to_ptr.hbm [resolvable:$true] %s97_s30 }
   0xe   :  { %v50_v4 = vpack.c.bf16 %v49_v3, %v48_v2  ;;  %v129_v5 = vld [vmem:[%s255_s2] ss:$0 sm:$0xff] }
  0x11   :  { %82 = vmatpush.bf16.msra.mxu0 %v120_v1 }
  0x14   :  { %119 = vmatmul.msk.bf16.vlgmr.msra.gmra.mxu0 %vm71_vm0, %v50_v4 }
  0x91   :  { %v84_v6 = vpop.f32.mrf.mxu0 }
  0x92   :  { %v85_v7 = vadd.f32 %v129_v5, %v84_v6 }
  0x94   :  { %89 = vst.msk [vmem:[#allocation7] sm:$0xff] %vm71_vm0, %v85_v7 }
  0x99   :  { %v86_v8 = vpop.f32.mrf.mxu0 }
  0x9a   :  { %v87_v9 = vadd.f32 %v129_v5, %v86_v8 }
  0x9c   :  { %90 = vst.msk [vmem:[#allocation7 + $0x8] sm:$0xff] %vm71_vm0, %v87_v9 }
  0x9d   :  { %103 = dma.vmem_to_hbm [thread:$0]  %s96_s27, 256, %s98_s30, [#allocation4], %s209_s20, %s209_s20, %s210_s21  }
  0x9e   :  { %206 = dma.done.wait [#allocation4], 256  }
  0x9f   :  { %207 = vsyncadd [#allocation4], 4294967040 }
  0xa0   :  { %108 = vsyncpa [#allocation3], 1 }
  0xa1   :  { %109 = vsyncpa [#allocation6], 1 }
  0xa2   :  { %110 = vsyncpa [#allocation4], 1 }

</bundles_post_ra>
